<compile_context>
chip_gen: v7x
topology: tpu7x:2x2x1
jax: 0.10.0
libtpu: 0.0.40
codegen_flags: <defaults>
</compile_context>

<pallas_src>
import functools

import jax
import jax.numpy as jnp
from jax.experimental import pallas as pl
from jax.experimental.pallas import tpu as pltpu

IN_DIM = 256
HIDDEN_DIM = 128
OUT_DIM = 128

# Once the batch reaches this many rows, force the grid to have >=2 steps so
# both TensorCores on v7x are used (harmless single extra step elsewhere).
_MULTICORE_MIN_ROWS = 1024


def _mlp_kernel(x_ref, w1_ref, b1_ref, w2_ref, b2_ref, o_ref):
    # Linear(in->hidden) + ReLU (MXU matmul, f32 accumulation).
    h = jnp.dot(x_ref[...], w1_ref[...], preferred_element_type=jnp.float32)
    h = jnp.maximum(h + b1_ref[...], 0.0)      # b1 is [1, hidden] -> row bcast
    # Linear(hidden->out) + ReLU. Cast back to streaming dtype for the MXU.
    y = jnp.dot(h.astype(w2_ref.dtype), w2_ref[...],
                preferred_element_type=jnp.float32)
    y = jnp.maximum(y + b2_ref[...], 0.0)
    o_ref[...] = y.astype(o_ref.dtype)


def _round_up(n, m):
    return ((n + m - 1) // m) * m


@functools.partial(jax.jit, static_argnames=("block_b",))
def structure_encoder(x, w1, b1, w2, b2, *, block_b=4096):
    """x: [B, IN_DIM] -> [B, OUT_DIM]. Grid tiles the batch dimension.

    Fast path: pass x (and expect out) in bf16; weights may be bf16 or f32.
    """
    B, in_dim = x.shape
    assert in_dim == w1.shape[0]
    hidden = w1.shape[1]
    out_dim = w2.shape[1]

    # Accept 1-D biases (PyTorch nn.Linear convention) by reshaping to [1, F].
    if b1.ndim == 1:
        b1 = b1.reshape(1, hidden)
    if b2.ndim == 1:
        b2 = b2.reshape(1, out_dim)
    assert b1.shape == (1, hidden) and b2.shape == (1, out_dim)

    # Batch tile: as large as requested, capped by the (8-aligned) batch.
    bb = min(block_b, _round_up(B, 8))
    # Keep >=2 grid steps for big batches so v7x's two TensorCores both work.
    if B >= _MULTICORE_MIN_ROWS:
        bb = min(bb, _round_up(pl.cdiv(B, 2), 8))

    grid = (pl.cdiv(B, bb),)   # ragged tail handled by Pallas boundary block

    # Advisory cost estimate so XLA can schedule around this short call.
    itemsize = jnp.dtype(x.dtype).itemsize
    flops = 2 * B * (in_dim * hidden + hidden * out_dim)
    bytes_accessed = int(
        B * (in_dim + out_dim) * itemsize
        + (w1.size + b1.size) * jnp.dtype(w1.dtype).itemsize
        + (w2.size + b2.size) * jnp.dtype(w2.dtype).itemsize)
    cost = pl.CostEstimate(flops=flops, transcendentals=0,
                           bytes_accessed=bytes_accessed)

    # Constant-index (resident) operands don't need double buffering.
    resident = dict(pipeline_mode=pl.Buffered(1))

    out = pl.pallas_call(
        _mlp_kernel,
        out_shape=jax.ShapeDtypeStruct((B, out_dim), x.dtype),
        grid_spec=pltpu.PrefetchScalarGridSpec(
            num_scalar_prefetch=0,
            grid=grid,
            in_specs=[
                pl.BlockSpec((bb, in_dim), lambda i: (i, 0)),                   # x tile
                pl.BlockSpec((in_dim, hidden), lambda i: (0, 0), **resident),   # W1
                pl.BlockSpec((1, hidden), lambda i: (0, 0), **resident),        # b1
                pl.BlockSpec((hidden, out_dim), lambda i: (0, 0), **resident),  # W2
                pl.BlockSpec((1, out_dim), lambda i: (0, 0), **resident),       # b2
            ],
            out_specs=pl.BlockSpec((bb, out_dim), lambda i: (i, 0)),
        ),
        compiler_params=pltpu.CompilerParams(
            dimension_semantics=("parallel",),
            vmem_limit_bytes=48 * 1024 * 1024),
        cost_estimate=cost,
    )(x, w1, b1, w2, b2)
    return out


def init_params(key, in_dim=IN_DIM, hidden_dim=HIDDEN_DIM, out_dim=OUT_DIM,
                dtype=jnp.float32):
    """Deterministic synthetic parameters (shapes match nn.Linear layers)."""
    k1, k2, k3, k4 = jax.random.split(key, 4)
    # Stored as [in, out]; PyTorch nn.Linear weight would be the transpose.
    w1 = jax.random.normal(k1, (in_dim, hidden_dim), dtype) * 0.02
    b1 = jax.random.normal(k2, (1, hidden_dim), dtype) * 0.02
    w2 = jax.random.normal(k3, (hidden_dim, out_dim), dtype) * 0.02
    b2 = jax.random.normal(k4, (1, out_dim), dtype) * 0.02
    return w1, b1, w2, b2


def reference(x, w1, b1, w2, b2):
    h = jnp.maximum(x @ w1 + b1.reshape(1, -1), 0.0)
    return jnp.maximum(h @ w2 + b2.reshape(1, -1), 0.0)


if __name__ == "__main__":
    key = jax.random.PRNGKey(0)
    kx, kp = jax.random.split(key)

    w1, b1, w2, b2 = init_params(kp)

    # --- f32 path, exact check -------------------------------------------
    batch = 8
    x = jax.random.normal(kx, (batch, IN_DIM), jnp.float32)
    out = jax.block_until_ready(structure_encoder(x, w1, b1, w2, b2))
    ref = reference(x, w1, b1, w2, b2)
    assert out.shape == (batch, OUT_DIM)
    assert jnp.allclose(out, ref, atol=1e-5, rtol=1e-5), "f32 mismatch vs reference"

    # --- ragged batch (boundary block, no wrapper padding) ---------------
    x3 = jax.random.normal(jax.random.PRNGKey(1), (3, IN_DIM), jnp.float32)
    out3 = jax.block_until_ready(structure_encoder(x3, w1, b1, w2, b2))
    assert out3.shape == (3, OUT_DIM)
    assert jnp.allclose(out3, reference(x3, w1, b1, w2, b2),
                        atol=1e-5, rtol=1e-5), "ragged-batch mismatch"

    # --- multi-step grid + ragged tail (small tile to force several steps),
    #     plus 1-D bias acceptance -----------------------------------------
    x40 = jax.random.normal(jax.random.PRNGKey(2), (40, IN_DIM), jnp.float32)
    out40 = jax.block_until_ready(
        structure_encoder(x40, w1, b1.reshape(-1), w2, b2.reshape(-1),
                          block_b=16))
    assert out40.shape == (40, OUT_DIM)
    assert jnp.allclose(out40, reference(x40, w1, b1, w2, b2),
                        atol=1e-5, rtol=1e-5), "multi-step grid mismatch"

    # --- bf16 streaming path (mem-bound fast path), loose tolerance -------
    xb = x.astype(jnp.bfloat16)
    pb = tuple(p.astype(jnp.bfloat16) for p in (w1, b1, w2, b2))
    outb = jax.block_until_ready(structure_encoder(xb, *pb))
    assert outb.shape == (batch, OUT_DIM)
    assert jnp.allclose(outb.astype(jnp.float32), ref,
                        atol=2e-2, rtol=1e-1), "bf16 mismatch vs f32 reference"

    print("KERNEL_OK")
</pallas_src>

<mosaic_0001>
module attributes {stable_mosaic.version = 11 : i64} {
  func.func @_mlp_kernel(%arg0: i32, %arg1: memref<8x256xf32, #tpu.memory_space<vmem>>, %arg2: memref<256x128xf32, #tpu.memory_space<vmem>>, %arg3: memref<1x128xf32, #tpu.memory_space<vmem>>, %arg4: memref<128x128xf32, #tpu.memory_space<vmem>>, %arg5: memref<1x128xf32, #tpu.memory_space<vmem>>, %arg6: memref<8x128xf32, #tpu.memory_space<vmem>>) attributes {dimension_semantics = [#tpu.dimension_semantics<parallel>], iteration_bounds = array<i64: 1>, scalar_prefetch = 0 : i64, scratch_operands = 0 : i64, tpu.core_type = #tpu.core_type<tc>, window_params = [{transform_indices = @transform_0, window_bounds = array<i64: 8, 256>}, {pipeline_mode = #tpu.pipeline_mode<synchronous>, transform_indices = @transform_1, window_bounds = array<i64: 256, 128>}, {pipeline_mode = #tpu.pipeline_mode<synchronous>, transform_indices = @transform_2, window_bounds = array<i64: 1, 128>}, {pipeline_mode = #tpu.pipeline_mode<synchronous>, transform_indices = @transform_3, window_bounds = array<i64: 128, 128>}, {pipeline_mode = #tpu.pipeline_mode<synchronous>, transform_indices = @transform_4, window_bounds = array<i64: 1, 128>}, {transform_indices = @transform_5, window_bounds = array<i64: 8, 128>}]} {
    %c0 = arith.constant 0 : index
    %c0_0 = arith.constant 0 : index
    %0 = vector.load %arg1[%c0, %c0_0] : memref<8x256xf32, #tpu.memory_space<vmem>>, vector<8x256xf32>
    %c0_1 = arith.constant 0 : index
    %c0_2 = arith.constant 0 : index
    %1 = vector.load %arg2[%c0_1, %c0_2] : memref<256x128xf32, #tpu.memory_space<vmem>>, vector<256x128xf32>
    %cst = arith.constant dense<0.000000e+00> : vector<8x128xf32>
    %2 = tpu.matmul %0, %1, %cst {dimension_numbers = #tpu.dot_dimension_numbers<[1], [0], [0], [1], [0, 0, 1, 1], [], []>} : vector<8x256xf32>, vector<256x128xf32>, vector<8x128xf32> -> vector<8x128xf32>
    %c0_3 = arith.constant 0 : index
    %c0_4 = arith.constant 0 : index
    %3 = vector.load %arg3[%c0_3, %c0_4] : memref<1x128xf32, #tpu.memory_space<vmem>>, vector<1x128xf32>
    %4 = vector.broadcast %3 : vector<1x128xf32> to vector<8x128xf32>
    %5 = arith.addf %2, %4 : vector<8x128xf32>
    %cst_5 = arith.constant 0.000000e+00 : f32
    %6 = vector.broadcast %cst_5 : f32 to vector<8x128xf32>
    %7 = arith.maximumf %5, %6 : vector<8x128xf32>
    %c0_6 = arith.constant 0 : index
    %c0_7 = arith.constant 0 : index
    %8 = vector.load %arg4[%c0_6, %c0_7] : memref<128x128xf32, #tpu.memory_space<vmem>>, vector<128x128xf32>
    %cst_8 = arith.constant dense<0.000000e+00> : vector<8x128xf32>
    %9 = tpu.matmul %7, %8, %cst_8 {dimension_numbers = #tpu.dot_dimension_numbers<[1], [0], [0], [1], [0, 0, 1, 1], [], []>} : vector<8x128xf32>, vector<128x128xf32>, vector<8x128xf32> -> vector<8x128xf32>
    %c0_9 = arith.constant 0 : index
    %c0_10 = arith.constant 0 : index
    %10 = vector.load %arg5[%c0_9, %c0_10] : memref<1x128xf32, #tpu.memory_space<vmem>>, vector<1x128xf32>
    %11 = vector.broadcast %10 : vector<1x128xf32> to vector<8x128xf32>
    %12 = arith.addf %9, %11 : vector<8x128xf32>
    %cst_11 = arith.constant 0.000000e+00 : f32
    %13 = vector.broadcast %cst_11 : f32 to vector<8x128xf32>
    %14 = arith.maximumf %12, %13 : vector<8x128xf32>
    %c0_12 = arith.constant 0 : index
    %c0_13 = arith.constant 0 : index
    %15 = vector.load %arg6[%c0_12, %c0_13] : memref<8x128xf32, #tpu.memory_space<vmem>>, vector<8x128xf32>
    tpu.vector_store %arg6[%c0_12, %c0_13], %14 {strides = array<i32>} : memref<8x128xf32, #tpu.memory_space<vmem>>, vector<8x128xf32>,
    return
  }
  func.func @transform_0(%arg0: i32) -> (i32, i32) {
    %c0_i32 = arith.constant 0 : i32
    %c0_i32_0 = arith.constant 0 : i32
    return %arg0, %c0_i32 : i32, i32
  }
  func.func @transform_1(%arg0: i32) -> (i32, i32) {
    %c0_i32 = arith.constant 0 : i32
    %c0_i32_0 = arith.constant 0 : i32
    %c0_i32_1 = arith.constant 0 : i32
    return %c0_i32, %c0_i32_0 : i32, i32
  }
  func.func @transform_2(%arg0: i32) -> (i32, i32) {
    %c0_i32 = arith.constant 0 : i32
    %c0_i32_0 = arith.constant 0 : i32
    %c0_i32_1 = arith.constant 0 : i32
    return %c0_i32, %c0_i32_0 : i32, i32
  }
  func.func @transform_3(%arg0: i32) -> (i32, i32) {
    %c0_i32 = arith.constant 0 : i32
    %c0_i32_0 = arith.constant 0 : i32
    %c0_i32_1 = arith.constant 0 : i32
    return %c0_i32, %c0_i32_0 : i32, i32
  }
  func.func @transform_4(%arg0: i32) -> (i32, i32) {
    %c0_i32 = arith.constant 0 : i32
    %c0_i32_0 = arith.constant 0 : i32
    %c0_i32_1 = arith.constant 0 : i32
    return %c0_i32, %c0_i32_0 : i32, i32
  }
  func.func @transform_5(%arg0: i32) -> (i32, i32) {
    %c0_i32 = arith.constant 0 : i32
    %c0_i32_0 = arith.constant 0 : i32
    return %arg0, %c0_i32 : i32, i32
  }
}

</mosaic_0001>

<bundles_post_ra>
// kernel: structure_encoder.1
= control target key start
LH: loop header
LB: loop body
LE: loop exit
PB: predicated region body
PF: predicated region fallthrough
CT: control target
= control target key end

     0   :  { %10 = vsyncpa [#allocation3], 0  ;;  %s638_s0 = inlined_call_operand.hbm [shape: f32[8,256], index: 0, kind: input, shape index: {}]   ;;  %s639_s1 = inlined_call_operand.hbm [shape: f32[256,128], index: 1, kind: input, shape index: {}]   ;;  %s640_s2 = inlined_call_operand.vmem [shape: f32[1,128], index: 2, kind: input, shape index: {}]   ;;  %s641_s3 = inlined_call_operand.hbm [shape: f32[128,128], index: 3, kind: input, shape index: {}]   ;;  %s642_s4 = inlined_call_operand.vmem [shape: f32[1,128], index: 4, kind: input, shape index: {}]   ;;  %s643_s5 = inlined_call_operand.hbm [shape: f32[8,128], index: 5, kind: output, shape index: {}]  }
   0x1   :  { %11 = vsyncpa [#allocation6], 0 }
   0x2   :  { %12 = vsyncpa [#allocation4], 0  ;;  %s531_s18 = smov [#allocation5]   ;;  %s437_s22 = scalar_lea.hbm %s639_s1, 4096 }
   0x3   :  { %s28_s19 = sshll.u32 %s531_s18, 4  ;;  %p438_p0 = scmp.ne.s32.totalorder %s639_s1, %s437_s22  ;;  %s29_s19 = int_to_ptr.vmem [resolvable:$true] %s28_s19 }
   0x4   :  { %p441_p1 = scmp.lt.u32.totalorder %s437_s22, %s639_s1 }
   0x6   :  { %p443_p2 = pnand %p441_p1, %p438_p0 }
   0x8   :  { %446 = shalt.err (!%p443_p2)
}
   0x9   :  { %s447_s27 = scalar_lea.vmem %s29_s19, 4096  ;;  %p452_p4 = scmp.lt.s32.totalorder %s29_s19, %s29_s19 }
   0xa   :  { %p448_p3 = scmp.ne.s32.totalorder %s29_s19, %s447_s27  ;;  %p453_p5 = scmp.lt.s32.totalorder %s447_s27, %s447_s27 }
   0xc   :  { %p454_p6 = por %p453_p5, %p452_p4 }
   0xe   :  { %p455_p7 = pnand %p454_p6, %p448_p3 }
  0x10   :  { %458 = shalt.err (!%p455_p7)
}
  0x11   :  { %s532_s28 = smov 128   ;;  %s533_s29 = smov 8  }
  0x12   :  { %34 = dma.hbm_to_vmem [thread:$0]  %s639_s1, 4096, %s29_s19, [#allocation6], %s532_s28, %s532_s28, %s533_s29  }
  0x13   :  { %s534_s7 = smov [#allocation2]   ;;  %s535_s9 = smov [#allocation7]  }
  0x14   :  { %s19_s8 = sshll.u32 %s534_s7, 4  ;;  %s42_s10 = sshll.u32 %s535_s9, 4  ;;  %s20_s8 = int_to_ptr.vmem [resolvable:$true] %s19_s8  ;;  %s43_s10 = int_to_ptr.vmem [resolvable:$true] %s42_s10 }
  0x15   :  { %s459_s13 = scalar_lea.hbm %s638_s0, 256 }
  0x16   :  { %p460_p8 = scmp.ne.s32.totalorder %s638_s0, %s459_s13  ;;  %p463_p9 = scmp.lt.u32.totalorder %s459_s13, %s638_s0 }
  0x18   :  { %p465_p10 = pnand %p463_p9, %p460_p8 }
  0x1a   :  { %468 = shalt.err (!%p465_p10)
}
  0x1b   :  { %s469_s1 = scalar_lea.vmem %s20_s8, 256  ;;  %p474_p12 = scmp.lt.s32.totalorder %s20_s8, %s20_s8 }
  0x1c   :  { %p470_p11 = scmp.ne.s32.totalorder %s20_s8, %s469_s1  ;;  %p475_p13 = scmp.lt.s32.totalorder %s469_s1, %s469_s1 }
  0x1e   :  { %p476_p0 = por %p475_p13, %p474_p12 }
  0x20   :  { %p477_p1 = pnand %p476_p0, %p470_p11 }
  0x22   :  { %480 = shalt.err (!%p477_p1)
}
  0x23   :  { %22 = dma.hbm_to_vmem [thread:$0]  %s638_s0, 256, %s20_s8, [#allocation3]  }
  0x24   :  { %s481_s22 = scalar_lea.hbm %s641_s3, 2048 }
  0x25   :  { %p482_p2 = scmp.ne.s32.totalorder %s641_s3, %s481_s22  ;;  %p485_p3 = scmp.lt.u32.totalorder %s481_s22, %s641_s3 }
  0x27   :  { %p487_p4 = pnand %p485_p3, %p482_p2 }
  0x29   :  { %490 = shalt.err (!%p487_p4)
}
  0x2a   :  { %s491_s27 = scalar_lea.vmem %s43_s10, 2048  ;;  %p496_p6 = scmp.lt.s32.totalorder %s43_s10, %s43_s10 }
  0x2b   :  { %p492_p5 = scmp.ne.s32.totalorder %s43_s10, %s491_s27  ;;  %p497_p7 = scmp.lt.s32.totalorder %s491_s27, %s491_s27 }
  0x2d   :  { %p498_p8 = por %p497_p7, %p496_p6 }
  0x2f   :  { %p499_p9 = pnand %p498_p8, %p492_p5 }
  0x31   :  { %502 = shalt.err (!%p499_p9)
}
  0x32   :  { %48 = dma.hbm_to_vmem [thread:$0]  %s641_s3, 2048, %s43_s10, [#allocation6], %s532_s28, %s532_s28, %s533_s29  }
  0x33   :  { %525 = dma.done.wait [#allocation3], 256  }
  0x34   :  { %526 = vsyncadd [#allocation3], 4294967040 }
  0x35   :  { %527 = dma.done.wait [#allocation6], 6144  }
  0x36   :  { %528 = vsyncadd [#allocation6], 4294961152  ;;  %v536_v0 = vmov 0.0|0.0   ;;  %v78_v1 = vld [vmem:[#allocation5 + $0x80] sm:$0xff]  ;;  %v79_v2 = vld [vmem:[#allocation5 + $0x88] sm:$0xff]  ;;  %vm537_vm0 = vmmov 0  }
  0x37   :  { %404 = vmatprep.subr.bf16.mxu1 %v536_v0  ;;  %v62_v3 = vld [vmem:[#allocation5] sm:$0xff]  ;;  %v372_v4 = vpack.c.bf16 %v79_v2, %v78_v1  ;;  %v63_v5 = vld [vmem:[#allocation5 + $0x8] sm:$0xff]  ;;  %v80_v6 = vld [vmem:[#allocation5 + $0x90] sm:$0xff]  ;;  %s539_s7 = smov [#allocation8]  }
  0x38   :  { %v81_v7 = vld [vmem:[#allocation5 + $0x98] sm:$0xff]  ;;  %v374_v8 = vpack.c.bf16 %v63_v5, %v62_v3  ;;  %v64_v10 = vld [vmem:[#allocation5 + $0x10] sm:$0xff]  ;;  %v82_v12 = vld [vmem:[#allocation5 + $0xa0] sm:$0xff]  ;;  %s273_s8 = sshll.u32 %s539_s7, 4  ;;  %s274_s8 = int_to_ptr.vmem [resolvable:$true] %s273_s8 }
  0x39   :  { %v376_v9 = vpack.c.bf16 %v81_v7, %v80_v6  ;;  %v65_v11 = vld [vmem:[#allocation5 + $0x18] sm:$0xff]  ;;  %373 = vmatprep.subr.bf16.mxu0 %v372_v4  ;;  %v83_v13 = vld [vmem:[#allocation5 + $0xa8] sm:$0xff]  ;;  %v66_v16 = vld [vmem:[#allocation5 + $0x20] sm:$0xff]  ;;  %s503_s9 = scalar_lea.vmem %s274_s8, 128  ;;  %p508_p11 = scmp.lt.s32.totalorder %s274_s8, %s274_s8 }
  0x3a   :  { %375 = vmatpush3.bf16.msra.mxu0 %v374_v8  ;;  %v378_v14 = vpack.c.bf16 %v65_v11, %v64_v10  ;;  %v380_v15 = vpack.c.bf16 %v83_v13, %v82_v12  ;;  %v67_v17 = vld [vmem:[#allocation5 + $0x28] sm:$0xff]  ;;  %v84_v18 = vld [vmem:[#allocation5 + $0xb0] sm:$0xff]  ;;  %v85_v19 = vld [vmem:[#allocation5 + $0xb8] sm:$0xff]  ;;  %v538_v12 = vmov 0.0   ;;  %p504_p10 = scmp.ne.s32.totalorder %s274_s8, %s503_s9  ;;  %p509_p12 = scmp.lt.s32.totalorder %s503_s9, %s503_s9 }
  0x3b   :  { %377 = vmatprep.subr.bf16.mxu0 %v376_v9  ;;  %v382_v20 = vpack.c.bf16 %v67_v17, %v66_v16  ;;  %v384_v21 = vpack.c.bf16 %v85_v19, %v84_v18  ;;  %v68_v22 = vld [vmem:[#allocation5 + $0x30] sm:$0xff]  ;;  %v69_v23 = vld [vmem:[#allocation5 + $0x38] sm:$0xff]  ;;  %v86_v24 = vld [vmem:[#allocation5 + $0xc0] sm:$0xff]  ;;  %369 = vmatprep.mubr.msk.f32.mxu1 %vm537_vm0, %v538_v12 }
  0x3c   :  { %v87_v25 = vld [vmem:[#allocation5 + $0xc8] sm:$0xff]  ;;  %v61_v26 = vld [vmem:[#allocation2 + $0x8] sm:$0xff]  ;;  %v172_v27 = vld [vmem:[#allocation7] sm:$0xff]  ;;  %v386_v29 = vpack.c.bf16 %v69_v23, %v68_v22  ;;  %p510_p13 = por %p509_p12, %p508_p11 }
  0x3d   :  { %165 = vmatprep.mubr.f32.mxu0 %v61_v26  ;;  %v173_v28 = vld [vmem:[#allocation7 + $0x8] sm:$0xff]  ;;  %v174_v31 = vld [vmem:[#allocation7 + $0x10] sm:$0xff]  ;;  %v175_v32 = vld [vmem:[#allocation7 + $0x18] sm:$0xff]  ;;  %v388_v33 = vpack.c.bf16 %v87_v25, %v86_v24 }
  0x3e   :  { %379 = vmatpush3.bf16.msra.mxu0 %v378_v14  ;;  %v405_v30 = vpack.c.bf16 %v173_v28, %v172_v27  ;;  %v70_v34 = vld [vmem:[#allocation5 + $0x40] sm:$0xff]  ;;  %v71_v35 = vld [vmem:[#allocation5 + $0x48] sm:$0xff]  ;;  %v88_v36 = vld [vmem:[#allocation5 + $0xd0] sm:$0xff]  ;;  %v408_v38 = vpack.c.bf16 %v175_v32, %v174_v31  ;;  %p511_p0 = pnand %p510_p13, %p504_p10 }
  0x3f   :  { %381 = vmatprep.subr.bf16.mxu0 %v380_v15  ;;  %v89_v37 = vld [vmem:[#allocation5 + $0xd8] sm:$0xff]  ;;  %v176_v39 = vld [vmem:[#allocation7 + $0x20] sm:$0xff]  ;;  %v177_v40 = vld [vmem:[#allocation7 + $0x28] sm:$0xff]  ;;  %v390_v41 = vpack.c.bf16 %v71_v35, %v70_v34 }
  0x40   :  { %406 = vmatpush3.bf16.msra.mxu1 %v405_v30  ;;  %v392_v42 = vpack.c.bf16 %v89_v37, %v88_v36  ;;  %v72_v43 = vld [vmem:[#allocation5 + $0x50] sm:$0xff]  ;;  %v73_v44 = vld [vmem:[#allocation5 + $0x58] sm:$0xff]  ;;  %v90_v45 = vld [vmem:[#allocation5 + $0xe0] sm:$0xff]  ;;  %v411_v47 = vpack.c.bf16 %v177_v40, %v176_v39 }
  0x41   :  { %407 = vmatprep.subr.bf16.mxu1 %v536_v0  ;;  %v91_v46 = vld [vmem:[#allocation5 + $0xe8] sm:$0xff]  ;;  %v178_v48 = vld [vmem:[#allocation7 + $0x30] sm:$0xff]  ;;  %v179_v49 = vld [vmem:[#allocation7 + $0x38] sm:$0xff]  ;;  %v394_v50 = vpack.c.bf16 %v73_v44, %v72_v43 }
  0x42   :  { %383 = vmatpush3.bf16.msra.mxu0 %v382_v20  ;;  %v396_v51 = vpack.c.bf16 %v91_v46, %v90_v45  ;;  %v74_v52 = vld [vmem:[#allocation5 + $0x60] sm:$0xff]  ;;  %v75_v53 = vld [vmem:[#allocation5 + $0x68] sm:$0xff]  ;;  %v92_v54 = vld [vmem:[#allocation5 + $0xf0] sm:$0xff]  ;;  %v414_v56 = vpack.c.bf16 %v179_v49, %v178_v48 }
  0x43   :  { %385 = vmatprep.subr.bf16.mxu0 %v384_v21  ;;  %v93_v55 = vld [vmem:[#allocation5 + $0xf8] sm:$0xff]  ;;  %v180_v57 = vld [vmem:[#allocation7 + $0x40] sm:$0xff]  ;;  %v181_v58 = vld [vmem:[#allocation7 + $0x48] sm:$0xff]  ;;  %v398_v59 = vpack.c.bf16 %v75_v53, %v74_v52 }
  0x44   :  { %409 = vmatpush3.bf16.msra.mxu1 %v408_v38  ;;  %v400_v60 = vpack.c.bf16 %v93_v55, %v92_v54  ;;  %v76_v61 = vld [vmem:[#allocation5 + $0x70] sm:$0xff]  ;;  %v77_v62 = vld [vmem:[#allocation5 + $0x78] sm:$0xff]  ;;  %v417_v63 = vpack.c.bf16 %v181_v58, %v180_v57  ;;  %v184_v6 = vld [vmem:[#allocation7 + $0x60] sm:$0xff] }
  0x45   :  { %410 = vmatprep.subr.bf16.mxu1 %v536_v0  ;;  %v182_v1 = vld [vmem:[#allocation7 + $0x50] sm:$0xff]  ;;  %v183_v2 = vld [vmem:[#allocation7 + $0x58] sm:$0xff]  ;;  %v402_v3 = vpack.c.bf16 %v77_v62, %v76_v61  ;;  %v185_v7 = vld [vmem:[#allocation7 + $0x68] sm:$0xff] }
  0x46   :  { %387 = vmatpush3.bf16.msra.mxu0 %v386_v29  ;;  %v420_v4 = vpack.c.bf16 %v183_v2, %v182_v1  ;;  %v60_v5 = vld [vmem:[#allocation2] sm:$0xff]  ;;  %v423_v8 = vpack.c.bf16 %v185_v7, %v184_v6  ;;  %v187_v10 = vld [vmem:[#allocation7 + $0x78] sm:$0xff] }
  0x47   :  { %389 = vmatprep.subr.bf16.mxu0 %v388_v33  ;;  %v186_v9 = vld [vmem:[#allocation7 + $0x70] sm:$0xff] }
  0x48   :  { %412 = vmatpush3.bf16.msra.mxu1 %v411_v47  ;;  %v426_v11 = vpack.c.bf16 %v187_v10, %v186_v9  ;;  %v283_v14 = vld [vmem:[%s640_s2] ss:$0 sm:$0xff] }
  0x49   :  { %413 = vmatprep.subr.bf16.mxu1 %v536_v0 }
  0x4a   :  { %391 = vmatpush3.bf16.msra.mxu0 %v390_v41 }
  0x4b   :  { %393 = vmatprep.subr.bf16.mxu0 %v392_v42 }
  0x4c   :  { %415 = vmatpush3.bf16.msra.mxu1 %v414_v56 }
  0x4d   :  { %416 = vmatprep.subr.bf16.mxu1 %v536_v0 }
  0x4e   :  { %395 = vmatpush3.bf16.msra.mxu0 %v394_v50 }
  0x4f   :  { %397 = vmatprep.subr.bf16.mxu0 %v396_v51 }
  0x50   :  { %418 = vmatpush3.bf16.msra.mxu1 %v417_v63 }
  0x51   :  { %419 = vmatprep.subr.bf16.mxu1 %v536_v0 }
  0x52   :  { %399 = vmatpush3.bf16.msra.mxu0 %v398_v59 }
  0x53   :  { %401 = vmatprep.subr.bf16.mxu0 %v400_v60 }
  0x54   :  { %421 = vmatpush3.bf16.msra.mxu1 %v420_v4 }
  0x55   :  { %422 = vmatprep.subr.bf16.mxu1 %v536_v0 }
  0x56   :  { %403 = vmatpush3.bf16.msra.mxu0 %v402_v3 }
  0x58   :  { %424 = vmatpush3.bf16.msra.mxu1 %v423_v8 }
  0x59   :  { %166 = vmatmul.mubr.f32.vlgmr.msra.gmra.mrb[0].mxu0 %v60_v5  ;;  %425 = vmatprep.subr.bf16.mxu1 %v536_v0  ;;  %v284_v0 = vld [vmem:[%s642_s4] ss:$0 sm:$0xff] }
  0x5c   :  { %427 = vmatpush3.bf16.msra.mxu1 %v426_v11 }
 0x12c   :  { %v317_v13 = vpop.f32.mrb[0].mxu0 }
 0x12d   :  { %v318_v15 = vpop.f32.mrb[1].mxu0 }
 0x12e   :  { %v319_v16 = vadd.f32 %v318_v15, %v317_v13 }
 0x130   :  { %v168_v17 = vadd.f32 %v319_v16, %v283_v14 }
 0x132   :  { %v171_v18 = vmax.f32 %v168_v17, 0.0 }
 0x134   :  { %370 = vmatmul.mubr.f32.vlgmr.msra.gmra.mrb[0].mxu1 %v171_v18 }
 0x207   :  { %v261_v19 = vpop.f32.mrb[0].mxu1 }
 0x208   :  { %v262_v20 = vadd.f32 %v284_v0, %v261_v19  ;;  %v371_v21 = vpop.f32.mrb[1].mxu1 }
 0x20a   :  { %v265_v22 = vmax.f32 %v262_v20, 0.0 }
 0x20c   :  { %266 = vst [vmem:[#allocation8] sm:$0xff] %v265_v22 }
 0x20d   :  { %514 = shalt.err (!%p511_p0)
}
 0x20e   :  { %s515_s11 = scalar_lea.hbm %s643_s5, 128 }
 0x20f   :  { %p516_p1 = scmp.ne.s32.totalorder %s643_s5, %s515_s11  ;;  %p519_p2 = scmp.lt.u32.totalorder %s515_s11, %s643_s5 }
 0x211   :  { %p521_p3 = pnand %p519_p2, %p516_p1 }
 0x213   :  { %524 = shalt.err (!%p521_p3)
}
 0x214   :  { %276 = dma.vmem_to_hbm [thread:$0]  %s274_s8, 128, %s643_s5, [#allocation4]  }
 0x215   :  { %529 = dma.done.wait [#allocation4], 128  }
 0x216   :  { %530 = vsyncadd [#allocation4], 4294967168 }
 0x217   :  { %280 = vsyncpa [#allocation3], 1 }
 0x218   :  { %281 = vsyncpa [#allocation6], 1 }
 0x219   :  { %282 = vsyncpa [#allocation4], 1 }

</bundles_post_ra>
